<compile_context>
chip_gen: v7x
topology: tpu7x:2x2x1
jax: 0.10.0
libtpu: 0.0.40
codegen_flags: <defaults>
</compile_context>

<pallas_src>
import functools

import jax
import jax.numpy as jnp
from jax.experimental import pallas as pl
from jax.experimental.pallas import tpu as pltpu

LANES = 128
SUBLANES = 8
CHUNK = SUBLANES * LANES  # 1024 elements = minimal (8, 128) tile
# 2048 rows of f32 = 1 MiB per input per pipeline buffer -> ~4 MiB
# double-buffered for two f32 inputs plus a few block-sized f32 temporaries:
# comfortably under v5e's 16 MiB default scoped VMEM and near the HBM
# roofline on v5e/v6e/v7x. (Multiple of 16 and 32, so bf16/int8 targets pack.)
MAX_BLOCK_ROWS = 2048


def _elementwise_terms(p, t):
    """Per-element Tversky terms; each is summed directly (no cancellation)."""
    pt = p * t          # TP contribution
    fp = p - pt         # (1 - t) * p
    fn = t - pt         # t * (1 - p)
    return pt, fp, fn


def _ftl_partial_kernel(x_ref, t_ref, out_ref, *, block_rows, valid_rows, mask_last):
    """Per-block partial sums [TP, FP, FN] as lane-dense (1, 3, 8, 128) vregs.

    x_ref, t_ref: (block_rows, 128) VMEM tiles in their native dtype.
    out_ref:      (1, 3, 8, 128) f32 partials, reduced in the wrapper.
    """

    def compute(valid):
        p = jax.nn.sigmoid(x_ref[...].astype(jnp.float32))
        t = t_ref[...].astype(jnp.float32)
        if valid is not None:
            # Zero out rows past the true extent (partial last block may read
            # unspecified data); jnp.where selects, so garbage/NaN is dropped.
            p = jnp.where(valid, p, 0.0)
            t = jnp.where(valid, t, 0.0)
        pt, fp, fn = _elementwise_terms(p, t)
        # Pure VPU accumulation: regroup rows into (8, 128) vreg tiles and add.
        r8 = block_rows // SUBLANES
        out_ref[0, 0] = pt.reshape(r8, SUBLANES, LANES).sum(axis=0)
        out_ref[0, 1] = fp.reshape(r8, SUBLANES, LANES).sum(axis=0)
        out_ref[0, 2] = fn.reshape(r8, SUBLANES, LANES).sum(axis=0)

    if not mask_last:
        compute(None)
    else:
        is_last = pl.program_id(0) == pl.num_programs(0) - 1

        @pl.when(jnp.logical_not(is_last))
        def _():
            compute(None)  # unmasked fast path for all interior blocks

        @pl.when(is_last)
        def _():
            # Row-based bound (valid_rows = n // 128) -> no int32 overflow risk.
            row0 = pl.program_id(0) * block_rows
            row_iota = jax.lax.broadcasted_iota(
                jnp.int32, (block_rows, LANES), 0)
            compute((row0 + row_iota) < valid_rows)


def focal_tversky_loss(inputs, targets, smooth=1.0, alpha=0.5, beta=0.5, gamma=1.0):
    """Pallas TPU FocalTverskyLoss matching the PyTorch module's forward."""
    x = inputs.reshape(-1)
    t = targets.reshape(-1)
    n = x.shape[0]

    n_body = n - (n % CHUNK)  # 1024-aligned body streamed by the kernel
    tp = jnp.float32(0.0)
    fp = jnp.float32(0.0)
    fn = jnp.float32(0.0)

    if n_body:
        rows = n_body // LANES  # multiple of 8
        x2d = x[:n_body].reshape(rows, LANES)
        t2d = t[:n_body].reshape(rows, LANES)

        block_rows = min(rows, MAX_BLOCK_ROWS)
        num_blocks = pl.cdiv(rows, block_rows)
        mask_last = (rows % block_rows) != 0

        kernel = functools.partial(
            _ftl_partial_kernel,
            block_rows=block_rows,
            valid_rows=rows,
            mask_last=mask_last,
        )

        out_bytes = num_blocks * 3 * SUBLANES * LANES * 4
        cost = pl.CostEstimate(
            flops=5 * n_body,
            transcendentals=n_body,
            bytes_accessed=(
                x2d.size * x2d.dtype.itemsize
                + t2d.size * t2d.dtype.itemsize
                + out_bytes
            ),
        )

        partials = pl.pallas_call(
            kernel,
            out_shape=jax.ShapeDtypeStruct(
                (num_blocks, 3, SUBLANES, LANES), jnp.float32),
            grid_spec=pltpu.PrefetchScalarGridSpec(
                num_scalar_prefetch=0,
                grid=(num_blocks,),
                in_specs=[
                    pl.BlockSpec((block_rows, LANES), lambda i: (i, 0)),
                    pl.BlockSpec((block_rows, LANES), lambda i: (i, 0)),
                ],
                out_specs=pl.BlockSpec(
                    (1, 3, SUBLANES, LANES), lambda i: (i, 0, 0, 0)),
            ),
            compiler_params=pltpu.CompilerParams(
                dimension_semantics=("parallel",),  # independent block partials
                vmem_limit_bytes=32 << 20,          # headroom; ~10 MiB actually used
            ),
            cost_estimate=cost,
        )(x2d, t2d)

        sums = jnp.sum(partials, axis=(0, 2, 3))  # -> [TP, FP, FN]
        tp, fp, fn = sums[0], sums[1], sums[2]

    if n - n_body:
        # Ragged tail (< 1024 elements): plain jnp, no whole-array pad/copy.
        p_tail = jax.nn.sigmoid(x[n_body:].astype(jnp.float32))
        t_tail = t[n_body:].astype(jnp.float32)
        pt_t, fp_t, fn_t = _elementwise_terms(p_tail, t_tail)
        tp = tp + jnp.sum(pt_t)
        fp = fp + jnp.sum(fp_t)
        fn = fn + jnp.sum(fn_t)

    tversky = (tp + smooth) / (tp + alpha * fp + beta * fn + smooth)
    return (1.0 - tversky) ** gamma


def focal_tversky_loss_ref(inputs, targets, smooth=1.0, alpha=0.5, beta=0.5, gamma=1.0):
    p = jax.nn.sigmoid(inputs.astype(jnp.float32)).reshape(-1)
    t = targets.astype(jnp.float32).reshape(-1)
    tp = jnp.sum(p * t)
    fp = jnp.sum((1.0 - t) * p)
    fn = jnp.sum(t * (1.0 - p))
    tversky = (tp + smooth) / (tp + alpha * fp + beta * fn + smooth)
    return (1.0 - tversky) ** gamma


if __name__ == "__main__":
    key = jax.random.PRNGKey(0)
    k1, k2, k3, k4 = jax.random.split(key, 4)

    # NCHW inputs as the PyTorch module would receive from a conv head.
    shape = (2, 4, 16, 16)  # 2048 elements: single aligned block, no tail
    logits = jax.random.normal(k1, shape, dtype=jnp.float32)
    targets = (jax.random.uniform(k2, shape) > 0.5).astype(jnp.float32)

    loss = jax.block_until_ready(focal_tversky_loss(logits, targets))
    ref = jax.block_until_ready(focal_tversky_loss_ref(logits, targets))
    assert jnp.allclose(loss, ref, atol=1e-5, rtol=1e-5), (loss, ref)

    # Ragged shape + narrow (bf16) targets: exercises the jnp tail path and the
    # in-kernel cast of a reduced-width targets stream (0/1 is exact in bf16).
    shape2 = (2, 3, 11, 19)  # 1254 elements: 1024-body kernel + 230-elem tail
    logits2 = jax.random.normal(k3, shape2, dtype=jnp.float32)
    targets2 = (jax.random.uniform(k4, shape2) > 0.5).astype(jnp.bfloat16)

    loss2 = jax.block_until_ready(focal_tversky_loss(logits2, targets2))
    ref2 = jax.block_until_ready(focal_tversky_loss_ref(logits2, targets2))
    assert jnp.allclose(loss2, ref2, atol=1e-5, rtol=1e-5), (loss2, ref2)

    print("KERNEL_OK")
</pallas_src>

<mosaic_0001>
module attributes {stable_mosaic.version = 11 : i64} {
  func.func @_ftl_partial_kernel(%arg0: i32, %arg1: memref<16x128xf32, #tpu.memory_space<vmem>>, %arg2: memref<16x128xf32, #tpu.memory_space<vmem>>, %arg3: memref<1x3x8x128xf32, #tpu.memory_space<vmem>>) attributes {dimension_semantics = [#tpu.dimension_semantics<parallel>], iteration_bounds = array<i64: 1>, scalar_prefetch = 0 : i64, scratch_operands = 0 : i64, tpu.core_type = #tpu.core_type<tc>, window_params = [{transform_indices = @transform_0, window_bounds = array<i64: 16, 128>}, {transform_indices = @transform_1, window_bounds = array<i64: 16, 128>}, {transform_indices = @transform_2, window_bounds = array<i64: 1, 3, 8, 128>}]} {
    %c0 = arith.constant 0 : index
    %c0_0 = arith.constant 0 : index
    %0 = vector.load %arg1[%c0, %c0_0] : memref<16x128xf32, #tpu.memory_space<vmem>>, vector<16x128xf32>
    %1 = arith.negf %0 : vector<16x128xf32>
    %2 = math.exp %1 : vector<16x128xf32>
    %cst = arith.constant 1.000000e+00 : f32
    %3 = vector.broadcast %cst : f32 to vector<16x128xf32>
    %4 = arith.addf %3, %2 : vector<16x128xf32>
    %5 = arith.divf %3, %4 : vector<16x128xf32>
    %c0_1 = arith.constant 0 : index
    %c0_2 = arith.constant 0 : index
    %6 = vector.load %arg2[%c0_1, %c0_2] : memref<16x128xf32, #tpu.memory_space<vmem>>, vector<16x128xf32>
    %7 = arith.mulf %5, %6 : vector<16x128xf32>
    %8 = arith.subf %5, %7 : vector<16x128xf32>
    %9 = arith.subf %6, %7 : vector<16x128xf32>
    %10 = vector.shape_cast %7 : vector<16x128xf32> to vector<2x8x128xf32>
    %cst_3 = arith.constant dense<0.000000e+00> : vector<8x128xf32>
    %11 = vector.multi_reduction <add>, %10, %cst_3 [0] : vector<2x8x128xf32> to vector<8x128xf32>
    %c0_4 = arith.constant 0 : index
    %c0_5 = arith.constant 0 : index
    %c0_6 = arith.constant 0 : index
    %c0_7 = arith.constant 0 : index
    %12 = vector.load %arg3[%c0_4, %c0_5, %c0_6, %c0_7] : memref<1x3x8x128xf32, #tpu.memory_space<vmem>>, vector<1x1x8x128xf32>
    %13 = vector.shape_cast %12 : vector<1x1x8x128xf32> to vector<8x128xf32>
    %14 = vector.shape_cast %11 : vector<8x128xf32> to vector<1x1x8x128xf32>
    tpu.vector_store %arg3[%c0_4, %c0_5, %c0_6, %c0_7], %14 {strides = array<i32>} : memref<1x3x8x128xf32, #tpu.memory_space<vmem>>, vector<1x1x8x128xf32>,
    %15 = vector.shape_cast %8 : vector<16x128xf32> to vector<2x8x128xf32>
    %cst_8 = arith.constant dense<0.000000e+00> : vector<8x128xf32>
    %16 = vector.multi_reduction <add>, %15, %cst_8 [0] : vector<2x8x128xf32> to vector<8x128xf32>
    %c0_9 = arith.constant 0 : index
    %c1 = arith.constant 1 : index
    %c0_10 = arith.constant 0 : index
    %c0_11 = arith.constant 0 : index
    %17 = vector.load %arg3[%c0_9, %c1, %c0_10, %c0_11] : memref<1x3x8x128xf32, #tpu.memory_space<vmem>>, vector<1x1x8x128xf32>
    %18 = vector.shape_cast %17 : vector<1x1x8x128xf32> to vector<8x128xf32>
    %19 = vector.shape_cast %16 : vector<8x128xf32> to vector<1x1x8x128xf32>
    tpu.vector_store %arg3[%c0_9, %c1, %c0_10, %c0_11], %19 {strides = array<i32>} : memref<1x3x8x128xf32, #tpu.memory_space<vmem>>, vector<1x1x8x128xf32>,
    %20 = vector.shape_cast %9 : vector<16x128xf32> to vector<2x8x128xf32>
    %cst_12 = arith.constant dense<0.000000e+00> : vector<8x128xf32>
    %21 = vector.multi_reduction <add>, %20, %cst_12 [0] : vector<2x8x128xf32> to vector<8x128xf32>
    %c0_13 = arith.constant 0 : index
    %c2 = arith.constant 2 : index
    %c0_14 = arith.constant 0 : index
    %c0_15 = arith.constant 0 : index
    %22 = vector.load %arg3[%c0_13, %c2, %c0_14, %c0_15] : memref<1x3x8x128xf32, #tpu.memory_space<vmem>>, vector<1x1x8x128xf32>
    %23 = vector.shape_cast %22 : vector<1x1x8x128xf32> to vector<8x128xf32>
    %24 = vector.shape_cast %21 : vector<8x128xf32> to vector<1x1x8x128xf32>
    tpu.vector_store %arg3[%c0_13, %c2, %c0_14, %c0_15], %24 {strides = array<i32>} : memref<1x3x8x128xf32, #tpu.memory_space<vmem>>, vector<1x1x8x128xf32>,
    return
  }
  func.func @transform_0(%arg0: i32) -> (i32, i32) {
    %c0_i32 = arith.constant 0 : i32
    %c0_i32_0 = arith.constant 0 : i32
    return %arg0, %c0_i32 : i32, i32
  }
  func.func @transform_1(%arg0: i32) -> (i32, i32) {
    %c0_i32 = arith.constant 0 : i32
    %c0_i32_0 = arith.constant 0 : i32
    return %arg0, %c0_i32 : i32, i32
  }
  func.func @transform_2(%arg0: i32) -> (i32, i32, i32, i32) {
    %c0_i32 = arith.constant 0 : i32
    %c0_i32_0 = arith.constant 0 : i32
    %c0_i32_1 = arith.constant 0 : i32
    %c0_i32_2 = arith.constant 0 : i32
    return %arg0, %c0_i32, %c0_i32_0, %c0_i32_1 : i32, i32, i32, i32
  }
}

</mosaic_0001>

<bundles_post_ra>
// kernel: tpu_custom_call.1
= control target key start
LH: loop header
LB: loop body
LE: loop exit
PB: predicated region body
PF: predicated region fallthrough
CT: control target
= control target key end

     0   :  { %7 = vsyncpa [#allocation3], 0  ;;  %s240_s0 = inlined_call_operand.hbm [shape: f32[16,128], index: 0, kind: input, shape index: {}]   ;;  %s241_s1 = inlined_call_operand.hbm [shape: f32[16,128], index: 1, kind: input, shape index: {}]   ;;  %s242_s2 = inlined_call_operand.hbm [shape: f32[1,3,8,128], index: 2, kind: output, shape index: {}]  }
   0x1   :  { %8 = vsyncpa [#allocation6], 0 }
   0x2   :  { %9 = vsyncpa [#allocation4], 0  ;;  %s175_s9 = smov [#allocation2]   ;;  %s103_s13 = scalar_lea.hbm %s240_s0, 256 }
   0x3   :  { %s15_s10 = sshll.u32 %s175_s9, 4  ;;  %p104_p0 = scmp.ne.s32.totalorder %s240_s0, %s103_s13  ;;  %s16_s10 = int_to_ptr.vmem [resolvable:$true] %s15_s10 }
   0x4   :  { %p107_p1 = scmp.lt.u32.totalorder %s103_s13, %s240_s0 }
   0x6   :  { %p109_p2 = pnand %p107_p1, %p104_p0 }
   0x8   :  { %112 = shalt.err (!%p109_p2)
}
   0x9   :  { %s113_s18 = scalar_lea.vmem %s16_s10, 256  ;;  %p118_p4 = scmp.lt.s32.totalorder %s16_s10, %s16_s10 }
   0xa   :  { %p114_p3 = scmp.ne.s32.totalorder %s16_s10, %s113_s18  ;;  %p119_p5 = scmp.lt.s32.totalorder %s113_s18, %s113_s18 }
   0xc   :  { %p120_p6 = por %p119_p5, %p118_p4 }
   0xe   :  { %p121_p7 = pnand %p120_p6, %p114_p3 }
  0x10   :  { %124 = shalt.err (!%p121_p7)
}
  0x11   :  { %s176_s19 = smov 128   ;;  %s177_s20 = smov 8  }
  0x12   :  { %21 = dma.hbm_to_vmem [thread:$0]  %s240_s0, 256, %s16_s10, [#allocation3], %s176_s19, %s176_s19, %s177_s20  }
  0x13   :  { %s178_s23 = smov [#allocation5]   ;;  %s125_s27 = scalar_lea.hbm %s241_s1, 256 }
  0x14   :  { %s27_s24 = sshll.u32 %s178_s23, 4  ;;  %p126_p8 = scmp.ne.s32.totalorder %s241_s1, %s125_s27  ;;  %s28_s24 = int_to_ptr.vmem [resolvable:$true] %s27_s24 }
  0x15   :  { %p129_p9 = scmp.lt.u32.totalorder %s125_s27, %s241_s1 }
  0x17   :  { %p131_p10 = pnand %p129_p9, %p126_p8 }
  0x19   :  { %134 = shalt.err (!%p131_p10)
}
  0x1a   :  { %s135_s4 = scalar_lea.vmem %s28_s24, 256  ;;  %p140_p12 = scmp.lt.s32.totalorder %s28_s24, %s28_s24 }
  0x1b   :  { %p136_p11 = scmp.ne.s32.totalorder %s28_s24, %s135_s4  ;;  %p141_p13 = scmp.lt.s32.totalorder %s135_s4, %s135_s4 }
  0x1d   :  { %p142_p0 = por %p141_p13, %p140_p12 }
  0x1f   :  { %p143_p1 = pnand %p142_p0, %p136_p11 }
  0x21   :  { %146 = shalt.err (!%p143_p1)
}
  0x22   :  { %33 = dma.hbm_to_vmem [thread:$0]  %s241_s1, 256, %s28_s24, [#allocation6], %s176_s19, %s176_s19, %s177_s20  }
  0x23   :  { %169 = dma.done.wait [#allocation3], 256  }
  0x24   :  { %170 = vsyncadd [#allocation3], 4294967040 }
  0x25   :  { %171 = dma.done.wait [#allocation6], 256  }
  0x26   :  { %172 = vsyncadd [#allocation6], 4294967040  ;;  %v40_v0 = vld [vmem:[#allocation2] sm:$0xff]  ;;  %v41_v1 = vld [vmem:[#allocation2 + $0x8] sm:$0xff]  ;;  %s179_s1 = smov [#allocation7]  }
  0x27   :  { %v88_v2 = vmul.f32 -1.442695, %v40_v0  ;;  %v89_v3 = vmul.f32 -1.442695, %v41_v1  ;;  %v54_v8 = vld [vmem:[#allocation5] sm:$0xff]  ;;  %v55_v9 = vld [vmem:[#allocation5 + $0x8] sm:$0xff] }
  0x28   :  { %s75_s6 = sshll.u32 %s179_s1, 4  ;;  %s76_s6 = int_to_ptr.vmem [resolvable:$true] %s75_s6 }
  0x29   :  { %95 = vpow2.f32 %v88_v2  ;;  %s147_s7 = scalar_lea.vmem %s76_s6, 384  ;;  %p152_p3 = scmp.lt.s32.totalorder %s76_s6, %s76_s6 }
  0x2a   :  { %97 = vpow2.f32 %v89_v3  ;;  %p148_p2 = scmp.ne.s32.totalorder %s76_s6, %s147_s7  ;;  %p153_p4 = scmp.lt.s32.totalorder %s147_s7, %s147_s7 }
  0x2c   :  { %p154_p5 = por %p153_p4, %p152_p3 }
  0x2e   :  { %p155_p6 = pnand %p154_p5, %p148_p2 }
  0x33   :  { %v96_v4 = vpop.eup %95 }
  0x34   :  { %v98_v5 = vpop.eup %97  ;;  %v48_v6 = vadd.f32 1.0, %v96_v4 }
  0x35   :  { %v49_v7 = vadd.f32 1.0, %v98_v5 }
  0x36   :  { %99 = vrcp.f32 %v48_v6 }
  0x37   :  { %101 = vrcp.f32 %v49_v7 }
  0x40   :  { %v100_v10 = vpop.eup %99 }
  0x41   :  { %v102_v11 = vpop.eup %101  ;;  %v56_v12 = vmul.f32 %v100_v10, %v54_v8 }
  0x42   :  { %v57_v13 = vmul.f32 %v102_v11, %v55_v9 }
  0x43   :  { %v58_v14 = vsub.f32 %v100_v10, %v56_v12  ;;  %v60_v15 = vsub.f32 %v54_v8, %v56_v12 }
  0x44   :  { %v62_v16 = vadd.f32 %v57_v13, %v56_v12  ;;  %v59_v17 = vsub.f32 %v102_v11, %v57_v13  ;;  %v61_v18 = vsub.f32 %v55_v9, %v57_v13 }
  0x46   :  { %63 = vst [vmem:[#allocation7] sm:$0xff] %v62_v16  ;;  %v64_v19 = vadd.f32 %v59_v17, %v58_v14  ;;  %v67_v20 = vadd.f32 %v61_v18, %v60_v15 }
  0x48   :  { %66 = vst [vmem:[#allocation7 + $0x8] sm:$0xff] %v64_v19  ;;  %69 = vst [vmem:[#allocation7 + $0x10] sm:$0xff] %v67_v20 }
  0x49   :  { %158 = shalt.err (!%p155_p6)
}
  0x4a   :  { %s159_s10 = scalar_lea.hbm %s242_s2, 384 }
  0x4b   :  { %p160_p7 = scmp.ne.s32.totalorder %s242_s2, %s159_s10  ;;  %p163_p8 = scmp.lt.u32.totalorder %s159_s10, %s242_s2 }
  0x4d   :  { %p165_p9 = pnand %p163_p8, %p160_p7 }
  0x4f   :  { %168 = shalt.err (!%p165_p9)
}
  0x50   :  { %81 = dma.vmem_to_hbm [thread:$0]  %s76_s6, 384, %s242_s2, [#allocation4], %s176_s19, %s176_s19, %s177_s20  }
  0x51   :  { %173 = dma.done.wait [#allocation4], 384  }
  0x52   :  { %174 = vsyncadd [#allocation4], 4294966912 }
  0x53   :  { %85 = vsyncpa [#allocation3], 1 }
  0x54   :  { %86 = vsyncpa [#allocation6], 1 }
  0x55   :  { %87 = vsyncpa [#allocation4], 1 }

</bundles_post_ra>
